<compile_context>
chip_gen: v6e
topology: v6e:2x2x1
jax: 0.10.0
libtpu: 0.0.40
codegen_flags: <defaults>
</compile_context>

<pallas_src>
import math

import jax
import jax.numpy as jnp
from jax.experimental import pallas as pl
from jax.experimental.pallas import tpu as pltpu


def _level_geometry(h, w, num_levels):
    """Static pooling geometry for every pyramid level (matches the PyTorch module)."""
    levels = []
    total_bins = 0
    for i in range(num_levels):
        level = i + 1
        kh = math.ceil(h / level)
        kw = math.ceil(w / level)
        ph = math.floor((kh * level - h + 1) / 2)
        pw = math.floor((kw * level - w + 1) / 2)
        out_h = (h + 2 * ph - kh) // kh + 1
        out_w = (w + 2 * pw - kw) // kw + 1
        levels.append((kh, kw, ph, pw, out_h, out_w, total_bins))
        total_bins += out_h * out_w
    return levels, total_bins


def _pick_nc_tile(nc, h, w, dtype):
    """Largest lane tile that divides n*c, is a multiple of 128, and keeps the
    double-buffered input block comfortably inside the default scoped VMEM
    (16 MiB v5e / 32 MiB v6e, v7x)."""
    elem = jnp.dtype(dtype).itemsize
    budget = 4 * 1024 * 1024  # per input block; x2 double-buffer ~ 8 MiB
    if nc % 128 != 0:
        # Small / irregular channel counts: single full-width block (block equals
        # full array dims, so the (8,128) rule is satisfied).
        return nc
    for cand in (2048, 1024, 512, 256, 128):
        if nc % cand == 0 and h * w * cand * elem <= budget:
            return cand
    return 128


def _make_spp_kernel(h, w, levels, pool_type):
    """One kernel computing every pyramid level for one lane tile of n*c.

    x_ref: (h, w, nc_tile)   -- n*c on lanes
    o_ref: (total_bins, nc_tile), bins ordered level-major then (oh, ow)
    """
    is_max = pool_type == "max_pool"

    def kernel(x_ref, o_ref):
        x = x_ref[...]  # (h, w, nc_tile)
        if not is_max:
            x = x.astype(jnp.float32)  # f32 accumulation for avg pooling

        rows = []
        for (kh, kw, ph, pw, out_h, out_w, _off) in levels:
            inv_area = 1.0 / float(kh * kw)
            for oh in range(out_h):
                hs0 = oh * kh - ph
                hs, he = max(0, hs0), min(h, hs0 + kh)
                hband = x[hs:he]  # (valid_kh, w, nc) -- static slice
                # Stage 1: reduce over H -> (w, nc).  Elementwise across vregs (VPU).
                if is_max:
                    part = jnp.max(hband, axis=0)
                else:
                    part = jnp.sum(hband, axis=0)
                for ow in range(out_w):
                    ws0 = ow * kw - pw
                    ws, we = max(0, ws0), min(w, ws0 + kw)
                    win = part[ws:we]  # (valid_kw, nc)
                    # Stage 2: small sublane reduction over W -> (1, nc).
                    if is_max:
                        # F.max_pool2d pads with -inf: valid-region max is identical.
                        r = jnp.max(win, axis=0, keepdims=True)
                    else:
                        # F.avg_pool2d count_include_pad=True: pads are zeros, divisor
                        # is the full kernel area (static constant multiply).
                        r = jnp.sum(win, axis=0, keepdims=True) * inv_area
                    rows.append(r)

        out = jnp.concatenate(rows, axis=0)  # (total_bins, nc) -- one lane-dense store
        o_ref[...] = out.astype(o_ref.dtype)

    return kernel


def spp_layer_pallas(x, num_levels, pool_type="max_pool"):
    """Pallas implementation of SPPLayer.forward for NCHW input."""
    n, c, h, w = x.shape
    nc = n * c
    levels, total_bins = _level_geometry(h, w, num_levels)

    # Lane-dense layout: (n, c, h, w) -> (h, w, n*c).  Pure layout plumbing in XLA.
    xt = jnp.transpose(x, (2, 3, 0, 1)).reshape(h, w, nc)

    nc_tile = _pick_nc_tile(nc, h, w, x.dtype)
    grid = (nc // nc_tile,)

    kernel = _make_spp_kernel(h, w, levels, pool_type)

    pooled = pl.pallas_call(
        kernel,
        out_shape=jax.ShapeDtypeStruct((total_bins, nc), x.dtype),
        grid=grid,
        in_specs=[pl.BlockSpec((h, w, nc_tile), lambda j: (0, 0, j))],
        out_specs=pl.BlockSpec((total_bins, nc_tile), lambda j: (0, j)),
        compiler_params=pltpu.CompilerParams(
            dimension_semantics=("parallel",),
        ),
    )(xt)

    # Reorder the (small) pooled slab into the exact PyTorch flatten/concat order:
    # per level, (n, c, out_h, out_w).view(n, -1); concat over levels along dim 1.
    pooled = pooled.reshape(total_bins, n, c)
    pieces = []
    for (_kh, _kw, _ph, _pw, out_h, out_w, off) in levels:
        nbins = out_h * out_w
        part = pooled[off:off + nbins]            # (nbins, n, c)
        part = jnp.transpose(part, (1, 2, 0))     # (n, c, nbins)
        pieces.append(part.reshape(n, c * nbins))
    return jnp.concatenate(pieces, axis=1)

# TODO(synk): SPPLayer.spp() (hard-coded levels [500, 250], 2-D input) is unused by
# forward() and not translated.


def _reference_spp(x, num_levels, pool_type="max_pool"):
    """Pure-JAX reference using lax.reduce_window (mirrors F.max/avg_pool2d)."""
    pieces = []
    n, c, h, w = x.shape
    for i in range(num_levels):
        level = i + 1
        kh = math.ceil(h / level)
        kw = math.ceil(w / level)
        ph = math.floor((kh * level - h + 1) / 2)
        pw = math.floor((kw * level - w + 1) / 2)
        if pool_type == "max_pool":
            pooled = jax.lax.reduce_window(
                x, -jnp.inf, jax.lax.max,
                window_dimensions=(1, 1, kh, kw),
                window_strides=(1, 1, kh, kw),
                padding=((0, 0), (0, 0), (ph, ph), (pw, pw)),
            )
        else:
            summed = jax.lax.reduce_window(
                x, 0.0, jax.lax.add,
                window_dimensions=(1, 1, kh, kw),
                window_strides=(1, 1, kh, kw),
                padding=((0, 0), (0, 0), (ph, ph), (pw, pw)),
            )
            pooled = summed / float(kh * kw)
        pieces.append(pooled.reshape(n, -1))
    return jnp.concatenate(pieces, axis=1)


if __name__ == "__main__":
    key = jax.random.PRNGKey(0)
    # Small NCHW conv-feature-like input.
    x = jax.random.normal(key, (2, 4, 16, 16), dtype=jnp.float32)
    num_levels = 3

    spp_jit = jax.jit(spp_layer_pallas, static_argnums=(1, 2))

    # max_pool path
    out_max = jax.block_until_ready(spp_jit(x, num_levels, "max_pool"))
    ref_max = _reference_spp(x, num_levels, "max_pool")
    assert out_max.shape == (2, 4 * (1 + 4 + 9)), out_max.shape
    assert jnp.allclose(out_max, ref_max, atol=1e-6), "max_pool mismatch vs reference"

    # avg_pool path
    out_avg = jax.block_until_ready(spp_jit(x, num_levels, "avg_pool"))
    ref_avg = _reference_spp(x, num_levels, "avg_pool")
    assert out_avg.shape == (2, 4 * (1 + 4 + 9)), out_avg.shape
    assert jnp.allclose(out_avg, ref_avg, atol=1e-5), "avg_pool mismatch vs reference"

    print("KERNEL_OK")
</pallas_src>

<mosaic_0001>
module attributes {stable_mosaic.version = 11 : i64} {
  func.func @kernel(%arg0: i32, %arg1: memref<16x16x8xf32, #tpu.memory_space<vmem>>, %arg2: memref<14x8xf32, #tpu.memory_space<vmem>>) attributes {dimension_semantics = [#tpu.dimension_semantics<parallel>], iteration_bounds = array<i64: 1>, scalar_prefetch = 0 : i64, scratch_operands = 0 : i64, tpu.core_type = #tpu.core_type<tc>, window_params = [{transform_indices = @transform_0, window_bounds = array<i64: 16, 16, 8>}, {transform_indices = @transform_1, window_bounds = array<i64: 14, 8>}]} {
    %c0 = arith.constant 0 : index
    %c0_0 = arith.constant 0 : index
    %c0_1 = arith.constant 0 : index
    %0 = vector.load %arg1[%c0, %c0_0, %c0_1] : memref<16x16x8xf32, #tpu.memory_space<vmem>>, vector<16x16x8xf32>
    %cst = arith.constant dense<0xFF800000> : vector<16x8xf32>
    %1 = vector.multi_reduction <maximumf>, %0, %cst [0] : vector<16x16x8xf32> to vector<16x8xf32>
    %cst_2 = arith.constant dense<0xFF800000> : vector<8xf32>
    %2 = vector.multi_reduction <maximumf>, %1, %cst_2 [0] : vector<16x8xf32> to vector<8xf32>
    %3 = vector.shape_cast %2 : vector<8xf32> to vector<1x8xf32>
    %4 = vector.extract_strided_slice %0 {offsets = [0, 0, 0], sizes = [8, 16, 8], strides = [1, 1, 1]} : vector<16x16x8xf32> to vector<8x16x8xf32>
    %cst_3 = arith.constant dense<0xFF800000> : vector<16x8xf32>
    %5 = vector.multi_reduction <maximumf>, %4, %cst_3 [0] : vector<8x16x8xf32> to vector<16x8xf32>
    %6 = vector.extract_strided_slice %5 {offsets = [0, 0], sizes = [8, 8], strides = [1, 1]} : vector<16x8xf32> to vector<8x8xf32>
    %cst_4 = arith.constant dense<0xFF800000> : vector<8xf32>
    %7 = vector.multi_reduction <maximumf>, %6, %cst_4 [0] : vector<8x8xf32> to vector<8xf32>
    %8 = vector.shape_cast %7 : vector<8xf32> to vector<1x8xf32>
    %9 = vector.extract_strided_slice %5 {offsets = [8, 0], sizes = [8, 8], strides = [1, 1]} : vector<16x8xf32> to vector<8x8xf32>
    %cst_5 = arith.constant dense<0xFF800000> : vector<8xf32>
    %10 = vector.multi_reduction <maximumf>, %9, %cst_5 [0] : vector<8x8xf32> to vector<8xf32>
    %11 = vector.shape_cast %10 : vector<8xf32> to vector<1x8xf32>
    %12 = vector.extract_strided_slice %0 {offsets = [8, 0, 0], sizes = [8, 16, 8], strides = [1, 1, 1]} : vector<16x16x8xf32> to vector<8x16x8xf32>
    %cst_6 = arith.constant dense<0xFF800000> : vector<16x8xf32>
    %13 = vector.multi_reduction <maximumf>, %12, %cst_6 [0] : vector<8x16x8xf32> to vector<16x8xf32>
    %14 = vector.extract_strided_slice %13 {offsets = [0, 0], sizes = [8, 8], strides = [1, 1]} : vector<16x8xf32> to vector<8x8xf32>
    %cst_7 = arith.constant dense<0xFF800000> : vector<8xf32>
    %15 = vector.multi_reduction <maximumf>, %14, %cst_7 [0] : vector<8x8xf32> to vector<8xf32>
    %16 = vector.shape_cast %15 : vector<8xf32> to vector<1x8xf32>
    %17 = vector.extract_strided_slice %13 {offsets = [8, 0], sizes = [8, 8], strides = [1, 1]} : vector<16x8xf32> to vector<8x8xf32>
    %cst_8 = arith.constant dense<0xFF800000> : vector<8xf32>
    %18 = vector.multi_reduction <maximumf>, %17, %cst_8 [0] : vector<8x8xf32> to vector<8xf32>
    %19 = vector.shape_cast %18 : vector<8xf32> to vector<1x8xf32>
    %20 = vector.extract_strided_slice %0 {offsets = [0, 0, 0], sizes = [5, 16, 8], strides = [1, 1, 1]} : vector<16x16x8xf32> to vector<5x16x8xf32>
    %cst_9 = arith.constant dense<0xFF800000> : vector<16x8xf32>
    %21 = vector.multi_reduction <maximumf>, %20, %cst_9 [0] : vector<5x16x8xf32> to vector<16x8xf32>
    %22 = vector.extract_strided_slice %21 {offsets = [0, 0], sizes = [5, 8], strides = [1, 1]} : vector<16x8xf32> to vector<5x8xf32>
    %cst_10 = arith.constant dense<0xFF800000> : vector<8xf32>
    %23 = vector.multi_reduction <maximumf>, %22, %cst_10 [0] : vector<5x8xf32> to vector<8xf32>
    %24 = vector.shape_cast %23 : vector<8xf32> to vector<1x8xf32>
    %25 = vector.extract_strided_slice %21 {offsets = [5, 0], sizes = [6, 8], strides = [1, 1]} : vector<16x8xf32> to vector<6x8xf32>
    %cst_11 = arith.constant dense<0xFF800000> : vector<8xf32>
    %26 = vector.multi_reduction <maximumf>, %25, %cst_11 [0] : vector<6x8xf32> to vector<8xf32>
    %27 = vector.shape_cast %26 : vector<8xf32> to vector<1x8xf32>
    %28 = vector.extract_strided_slice %21 {offsets = [11, 0], sizes = [5, 8], strides = [1, 1]} : vector<16x8xf32> to vector<5x8xf32>
    %cst_12 = arith.constant dense<0xFF800000> : vector<8xf32>
    %29 = vector.multi_reduction <maximumf>, %28, %cst_12 [0] : vector<5x8xf32> to vector<8xf32>
    %30 = vector.shape_cast %29 : vector<8xf32> to vector<1x8xf32>
    %31 = vector.extract_strided_slice %0 {offsets = [5, 0, 0], sizes = [6, 16, 8], strides = [1, 1, 1]} : vector<16x16x8xf32> to vector<6x16x8xf32>
    %cst_13 = arith.constant dense<0xFF800000> : vector<16x8xf32>
    %32 = vector.multi_reduction <maximumf>, %31, %cst_13 [0] : vector<6x16x8xf32> to vector<16x8xf32>
    %33 = vector.extract_strided_slice %32 {offsets = [0, 0], sizes = [5, 8], strides = [1, 1]} : vector<16x8xf32> to vector<5x8xf32>
    %cst_14 = arith.constant dense<0xFF800000> : vector<8xf32>
    %34 = vector.multi_reduction <maximumf>, %33, %cst_14 [0] : vector<5x8xf32> to vector<8xf32>
    %35 = vector.shape_cast %34 : vector<8xf32> to vector<1x8xf32>
    %36 = vector.extract_strided_slice %32 {offsets = [5, 0], sizes = [6, 8], strides = [1, 1]} : vector<16x8xf32> to vector<6x8xf32>
    %cst_15 = arith.constant dense<0xFF800000> : vector<8xf32>
    %37 = vector.multi_reduction <maximumf>, %36, %cst_15 [0] : vector<6x8xf32> to vector<8xf32>
    %38 = vector.shape_cast %37 : vector<8xf32> to vector<1x8xf32>
    %39 = vector.extract_strided_slice %32 {offsets = [11, 0], sizes = [5, 8], strides = [1, 1]} : vector<16x8xf32> to vector<5x8xf32>
    %cst_16 = arith.constant dense<0xFF800000> : vector<8xf32>
    %40 = vector.multi_reduction <maximumf>, %39, %cst_16 [0] : vector<5x8xf32> to vector<8xf32>
    %41 = vector.shape_cast %40 : vector<8xf32> to vector<1x8xf32>
    %42 = vector.extract_strided_slice %0 {offsets = [11, 0, 0], sizes = [5, 16, 8], strides = [1, 1, 1]} : vector<16x16x8xf32> to vector<5x16x8xf32>
    %cst_17 = arith.constant dense<0xFF800000> : vector<16x8xf32>
    %43 = vector.multi_reduction <maximumf>, %42, %cst_17 [0] : vector<5x16x8xf32> to vector<16x8xf32>
    %44 = vector.extract_strided_slice %43 {offsets = [0, 0], sizes = [5, 8], strides = [1, 1]} : vector<16x8xf32> to vector<5x8xf32>
    %cst_18 = arith.constant dense<0xFF800000> : vector<8xf32>
    %45 = vector.multi_reduction <maximumf>, %44, %cst_18 [0] : vector<5x8xf32> to vector<8xf32>
    %46 = vector.shape_cast %45 : vector<8xf32> to vector<1x8xf32>
    %47 = vector.extract_strided_slice %43 {offsets = [5, 0], sizes = [6, 8], strides = [1, 1]} : vector<16x8xf32> to vector<6x8xf32>
    %cst_19 = arith.constant dense<0xFF800000> : vector<8xf32>
    %48 = vector.multi_reduction <maximumf>, %47, %cst_19 [0] : vector<6x8xf32> to vector<8xf32>
    %49 = vector.shape_cast %48 : vector<8xf32> to vector<1x8xf32>
    %50 = vector.extract_strided_slice %43 {offsets = [11, 0], sizes = [5, 8], strides = [1, 1]} : vector<16x8xf32> to vector<5x8xf32>
    %cst_20 = arith.constant dense<0xFF800000> : vector<8xf32>
    %51 = vector.multi_reduction <maximumf>, %50, %cst_20 [0] : vector<5x8xf32> to vector<8xf32>
    %52 = vector.shape_cast %51 : vector<8xf32> to vector<1x8xf32>
    %53 = tpu.concatenate %3, %8, %11, %16, %19, %24, %27, %30, %35, %38, %41, %46, %49, %52 in 0 : vector<1x8xf32>, vector<1x8xf32>, vector<1x8xf32>, vector<1x8xf32>, vector<1x8xf32>, vector<1x8xf32>, vector<1x8xf32>, vector<1x8xf32>, vector<1x8xf32>, vector<1x8xf32>, vector<1x8xf32>, vector<1x8xf32>, vector<1x8xf32>, vector<1x8xf32> -> vector<14x8xf32>
    %c0_21 = arith.constant 0 : index
    %c0_22 = arith.constant 0 : index
    %54 = vector.load %arg2[%c0_21, %c0_22] : memref<14x8xf32, #tpu.memory_space<vmem>>, vector<14x8xf32>
    tpu.vector_store %arg2[%c0_21, %c0_22], %53 {strides = array<i32>} : memref<14x8xf32, #tpu.memory_space<vmem>>, vector<14x8xf32>,
    return
  }
  func.func @transform_0(%arg0: i32) -> (i32, i32, i32) {
    %c0_i32 = arith.constant 0 : i32
    %c0_i32_0 = arith.constant 0 : i32
    %c0_i32_1 = arith.constant 0 : i32
    return %c0_i32, %c0_i32_0, %arg0 : i32, i32, i32
  }
  func.func @transform_1(%arg0: i32) -> (i32, i32) {
    %c0_i32 = arith.constant 0 : i32
    %c0_i32_0 = arith.constant 0 : i32
    return %c0_i32, %arg0 : i32, i32
  }
}

</mosaic_0001>

<bundles_post_ra>
// kernel: spp_layer_pallas.1
= control target key start
LH: loop header
LB: loop body
LE: loop exit
PB: predicated region body
PF: predicated region fallthrough
CT: control target
= control target key end

     0   :  { %vm40_vm0 = vcmask 64512   ;;  %vm158_vm1 = vcmask 61440   ;;  %vm166_vm2 = vcmask 64517   ;;  %vm168_vm3 = vcmask 59392   ;;  %s568_s0 = inlined_call_operand.vmem [shape: f32[16,16,8], index: 0, kind: input, shape index: {}]   ;;  %s569_s1 = inlined_call_operand.vmem [shape: f32[14,8], index: 1, kind: output, shape index: {}]  }
   0x1   :  { %v8_v0 = vld [vmem:[%s568_s0] sm:$0xff]  ;;  %v9_v1 = vld [vmem:[%s568_s0 + $0x8] sm:$0xff]  ;;  %v10_v2 = vld [vmem:[%s568_s0 + $0x10] sm:$0xff]  ;;  %vm177_vm4 = vcmask 64515   ;;  %vm249_vm5 = vcmask 1040384   ;;  %vm251_vm6 = vcmask 1041408  }
   0x2   :  { %v11_v3 = vld [vmem:[%s568_s0 + $0x18] sm:$0xff]  ;;  %v12_v4 = vld [vmem:[%s568_s0 + $0x20] sm:$0xff]  ;;  %v13_v5 = vld [vmem:[%s568_s0 + $0x28] sm:$0xff]  ;;  %v41_v6 = vsel %vm40_vm0, %v8_v0, -inf  ;;  %v42_v7 = vsel %vm40_vm0, %v10_v2, -inf  ;;  %v72_v8 = vsel %vm40_vm0, %v9_v1, -inf }
   0x3   :  { %v14_v9 = vld [vmem:[%s568_s0 + $0x30] sm:$0xff]  ;;  %v15_v10 = vld [vmem:[%s568_s0 + $0x38] sm:$0xff]  ;;  %v16_v11 = vld [vmem:[%s568_s0 + $0x40] sm:$0xff]  ;;  %v43_v12 = vsel %vm40_vm0, %v12_v4, -inf  ;;  %v73_v13 = vsel %vm40_vm0, %v11_v3, -inf  ;;  %v74_v14 = vsel %vm40_vm0, %v13_v5, -inf }
   0x4   :  { %v17_v15 = vld [vmem:[%s568_s0 + $0x48] sm:$0xff]  ;;  %v18_v16 = vld [vmem:[%s568_s0 + $0x50] sm:$0xff]  ;;  %v19_v17 = vld [vmem:[%s568_s0 + $0x58] sm:$0xff]  ;;  %v44_v18 = vmax.f32 %v41_v6, %v43_v12  ;;  %v45_v19 = vsel %vm40_vm0, %v14_v9, -inf  ;;  %v47_v20 = vsel %vm40_vm0, %v16_v11, -inf  ;;  %v75_v21 = vmax.f32 %v72_v8, %v74_v14 }
   0x5   :  { %v20_v22 = vld [vmem:[%s568_s0 + $0x60] sm:$0xff]  ;;  %v22_v23 = vld [vmem:[%s568_s0 + $0x70] sm:$0xff]  ;;  %v335_v24 = vmax.f32 %v42_v7, %v45_v19  ;;  %v338_v25 = vsel %vm40_vm0, %v18_v16, -inf  ;;  %v76_v26 = vsel %vm40_vm0, %v15_v10, -inf  ;;  %v78_v27 = vsel %vm40_vm0, %v17_v15, -inf  ;;  %v21_v28 = vld [vmem:[%s568_s0 + $0x68] sm:$0xff] }
   0x6   :  { %v23_v29 = vld [vmem:[%s568_s0 + $0x78] sm:$0xff]  ;;  %v24_v30 = vld [vmem:[%s568_s0 + $0x80] sm:$0xff]  ;;  %v351_v31 = vmax.f32 %v44_v18, %v47_v20  ;;  %v354_v32 = vsel %vm40_vm0, %v20_v22, -inf  ;;  %v357_v33 = vsel %vm40_vm0, %v22_v23, -inf  ;;  %v359_v34 = vmax.f32 %v73_v13, %v76_v26  ;;  %v26_v35 = vld [vmem:[%s568_s0 + $0x90] sm:$0xff] }
   0x7   :  { %v28_v36 = vld [vmem:[%s568_s0 + $0xa0] sm:$0xff]  ;;  %v50_v37 = vmax.f32 %v335_v24, %v338_v25  ;;  %v370_v38 = vsel %vm40_vm0, %v24_v30, -inf  ;;  %v372_v39 = vmax.f32 %v75_v21, %v78_v27  ;;  %v375_v40 = vsel %vm40_vm0, %v19_v17, -inf  ;;  %v25_v41 = vld [vmem:[%s568_s0 + $0x88] sm:$0xff]  ;;  %v30_v42 = vld [vmem:[%s568_s0 + $0xb0] sm:$0xff] }
   0x8   :  { %v52_v43 = vmax.f32 %v351_v31, %v354_v32  ;;  %v386_v44 = vsel %vm40_vm0, %v26_v35, -inf  ;;  %v389_v45 = vsel %vm40_vm0, %v28_v36, -inf  ;;  %v81_v46 = vmax.f32 %v359_v34, %v375_v40  ;;  %v27_v47 = vld [vmem:[%s568_s0 + $0x98] sm:$0xff]  ;;  %v32_v48 = vld [vmem:[%s568_s0 + $0xc0] sm:$0xff]  ;;  %v34_v49 = vld [vmem:[%s568_s0 + $0xd0] sm:$0xff] }
   0x9   :  { %v54_v50 = vmax.f32 %v50_v37, %v357_v33  ;;  %v404_v51 = vsel %vm40_vm0, %v30_v42, -inf  ;;  %v407_v52 = vsel %vm40_vm0, %v21_v28, -inf  ;;  %v410_v53 = vsel %vm40_vm0, %v23_v29, -inf  ;;  %v29_v54 = vld [vmem:[%s568_s0 + $0xa8] sm:$0xff]  ;;  %v31_v55 = vld [vmem:[%s568_s0 + $0xb8] sm:$0xff]  ;;  %v36_v56 = vld [vmem:[%s568_s0 + $0xe0] sm:$0xff] }
   0xa   :  { %v56_v57 = vmax.f32 %v52_v43, %v370_v38  ;;  %v423_v58 = vsel %vm40_vm0, %v32_v48, -inf  ;;  %v426_v59 = vsel %vm40_vm0, %v34_v49, -inf  ;;  %v83_v60 = vmax.f32 %v372_v39, %v407_v52  ;;  %v33_v61 = vld [vmem:[%s568_s0 + $0xc8] sm:$0xff]  ;;  %v35_v62 = vld [vmem:[%s568_s0 + $0xd8] sm:$0xff]  ;;  %v38_v63 = vld [vmem:[%s568_s0 + $0xf0] sm:$0xff] }
   0xb   :  { %v58_v0 = vmax.f32 %v54_v50, %v386_v44  ;;  %v441_v1 = vsel %vm40_vm0, %v36_v56, -inf  ;;  %v85_v2 = vmax.f32 %v81_v46, %v410_v53  ;;  %v445_v3 = vsel %vm40_vm0, %v25_v41, -inf  ;;  %v37_v4 = vld [vmem:[%s568_s0 + $0xe8] sm:$0xff]  ;;  %v39_v5 = vld [vmem:[%s568_s0 + $0xf8] sm:$0xff] }
   0xc   :  { %v60_v6 = vmax.f32 %v56_v57, %v389_v45  ;;  %v455_v7 = vsel %vm40_vm0, %v38_v63, -inf  ;;  %v87_v8 = vmax.f32 %v83_v60, %v445_v3  ;;  %v459_v9 = vsel %vm40_vm0, %v27_v47, -inf }
   0xd   :  { %v62_v10 = vmax.f32 %v58_v0, %v404_v51  ;;  %v89_v11 = vmax.f32 %v85_v2, %v459_v9  ;;  %v464_v12 = vsel %vm40_vm0, %v29_v54, -inf  ;;  %v467_v13 = vsel %vm40_vm0, %v31_v55, -inf }
   0xe   :  { %v64_v14 = vmax.f32 %v60_v6, %v423_v58  ;;  %v91_v15 = vmax.f32 %v87_v8, %v464_v12  ;;  %v472_v16 = vsel %vm40_vm0, %v33_v61, -inf  ;;  %v475_v17 = vsel %vm40_vm0, %v35_v62, -inf }
   0xf   :  { %v66_v18 = vmax.f32 %v62_v10, %v426_v59  ;;  %v93_v19 = vmax.f32 %v89_v11, %v467_v13  ;;  %v480_v20 = vsel %vm40_vm0, %v37_v4, -inf  ;;  %v483_v21 = vsel %vm40_vm0, %v39_v5, -inf }
  0x10   :  { %v68_v22 = vmax.f32 %v64_v14, %v441_v1  ;;  %v95_v23 = vmax.f32 %v91_v15, %v472_v16  ;;  %v112_v26 = vmax.f32 %v52_v43, %v54_v50  ;;  %v113_v27 = vmax.f32 %v83_v60, %v85_v2 }
  0x11   :  { %v70_v28 = vmax.f32 %v66_v18, %v455_v7  ;;  %v97_v29 = vmax.f32 %v93_v19, %v475_v17  ;;  %v128_v30 = vmax.f32 %v370_v38, %v389_v45  ;;  %v129_v35 = vmax.f32 %v386_v44, %v404_v51 }
  0x12   :  { %v99_v36 = vmax.f32 %v95_v23, %v480_v20  ;;  %v114_v37 = vsel %vm40_vm0, %v112_v26, -inf  ;;  %v121_v41 = vsel %vm40_vm0, %v113_v27, -inf  ;;  %v135_v42 = vmax.f32 %v445_v3, %v464_v12 }
  0x13   :  { %v71_v43 = vmax.f32 %v68_v22, %v70_v28  ;;  %v101_v46 = vmax.f32 %v97_v29, %v483_v21  ;;  %v115_v47 = vrot.slane %v114_v37, 4  ;;  %v122_v48 = vrot.slane %v121_v41, 4 }
  0x14   :  { %v130_v49 = vmax.f32 %v128_v30, %v423_v58  ;;  %v131_v50 = vmax.f32 %v129_v35, %v426_v59  ;;  %v136_v54 = vmax.f32 %v459_v9, %v467_v13  ;;  %v137_v55 = vmax.f32 %v135_v42, %v472_v16 }
  0x15   :  { %v102_v56 = vmax.f32 %v99_v36, %v101_v46  ;;  %v103_v57 = vsel %vm40_vm0, %v71_v43, -inf  ;;  %v116_v60 = vmax.f32 %v114_v37, %v115_v47  ;;  %v123_v61 = vmax.f32 %v121_v41, %v122_v48 }
  0x16   :  { %v132_v62 = vmax.f32 %v130_v49, %v441_v1  ;;  %v133_v63 = vmax.f32 %v131_v50, %v455_v7  ;;  %v138_v0 = vmax.f32 %v136_v54, %v475_v17  ;;  %v139_v2 = vmax.f32 %v137_v55, %v480_v20 }
  0x17   :  { %v104_v4 = vsel %vm40_vm0, %v102_v56, -inf  ;;  %v117_v5 = vrot.slane %v116_v60, 2  ;;  %v124_v6 = vrot.slane %v123_v61, 2  ;;  %v156_v8 = vmax.f32 %v351_v31, %v335_v24 }
  0x18   :  { %v105_v10 = vmax.f32 %v103_v57, %v104_v4  ;;  %v134_v11 = vmax.f32 %v132_v62, %v133_v63  ;;  %v140_v14 = vmax.f32 %v138_v0, %v483_v21  ;;  %v157_v15 = vmax.f32 %v372_v39, %v359_v34 }
  0x19   :  { %v118_v18 = vmax.f32 %v116_v60, %v117_v5  ;;  %v125_v19 = vmax.f32 %v123_v61, %v124_v6  ;;  %v159_v22 = vsel %vm158_vm1, %v156_v8, -inf  ;;  %v167_v23 = vsel %vm166_vm2, %v156_v8, -inf }
  0x1a   :  { %v106_v26 = vrot.slane %v105_v10, 4  ;;  %v141_v27 = vmax.f32 %v139_v2, %v140_v14  ;;  %v142_v28 = vsel %vm40_vm0, %v134_v11, -inf  ;;  %v160_v29 = vrot.slane %v159_v22, 4 }
  0x1b   :  { %v143_v30 = vrot.slane %v142_v28, 4  ;;  %v169_v24 = vsel %vm168_vm3, %v157_v15, -inf  ;;  %v119_v39 = vrot.slane %v118_v18, 1  ;;  %v126_v37 = vrot.slane %v125_v19, 1 }
  0x1c   :  { %v107_v31 = vmax.f32 %v105_v10, %v106_v26  ;;  %v149_v35 = vsel %vm40_vm0, %v141_v27, -inf  ;;  %v161_v36 = vmax.f32 %v159_v22, %v160_v29  ;;  %v170_v34 = vmax.f32 %v167_v23, %v169_v24 }
  0x1d   :  { %v144_v41 = vmax.f32 %v142_v28, %v143_v30  ;;  %v150_v42 = vrot.slane %v149_v35, 4  ;;  %v178_v48 = vsel %vm177_vm4, %v157_v15, -inf  ;;  %v185_v55 = vmax.f32 %v338_v25, %v357_v33 }
  0x1e   :  { %v108_v43 = vrot.slane %v107_v31, 2  ;;  %v162_v46 = vrot.slane %v161_v36, 2  ;;  %v171_v47 = vrot.slane %v170_v34, 4  ;;  %v179_v54 = vrot.slane %v178_v48, 4 }
  0x1f   :  { %v145_v49 = vrot.slane %v144_v41, 2  ;;  %v151_v50 = vmax.f32 %v149_v35, %v150_v42  ;;  %v186_v61 = vmax.f32 %v354_v32, %v370_v38  ;;  %v187_v2 = vmax.f32 %v185_v55, %v386_v44 }
  0x20   :  { %v109_v56 = vmax.f32 %v107_v31, %v108_v43  ;;  %v163_v57 = vmax.f32 %v161_v36, %v162_v46  ;;  %v172_v60 = vmax.f32 %v170_v34, %v171_v47  ;;  %v180_v0 = vmax.f32 %v178_v48, %v179_v54 }
  0x21   :  { %v146_v62 = vmax.f32 %v144_v41, %v145_v49  ;;  %v152_v63 = vrot.slane %v151_v50, 2  ;;  %v188_v8 = vmax.f32 %v186_v61, %v389_v45  ;;  %v190_v11 = vmax.f32 %v375_v40, %v410_v53 }
  0x22   :  { %v110_v4 = vrot.slane %v109_v56, 1  ;;  %v164_v5 = vrot.slane %v163_v57, 1  ;;  %v173_v6 = vrot.slane %v172_v60, 2  ;;  %v181_v33 = vrot.slane %v180_v0, 2 }
  0x23   :  { %v147_v10 = vrot.slane %v146_v62, 1  ;;  %v153_v25 = vmax.f32 %v151_v50, %v152_v63  ;;  %v120_v14 = vmax.f32 %v118_v18, %v119_v39  ;;  %v127_v15 = vmax.f32 %v125_v19, %v126_v37 }
  0x24   :  { %v174_v32 = vmax.f32 %v172_v60, %v173_v6  ;;  %v189_v38 = vmax.f32 %v187_v2, %v188_v8  ;;  %v111_v22 = vmax.f32 %v109_v56, %v110_v4  ;;  %v182_v26 = vmax.f32 %v180_v0, %v181_v33 }
  0x25   :  { %v154_v23 = vrot.slane %v153_v25, 1  ;;  %v191_v44 = vmax.f32 %v407_v52, %v445_v3  ;;  %v148_v27 = vmax.f32 %v146_v62, %v147_v10  ;;  %v165_v28 = vmax.f32 %v163_v57, %v164_v5 }
  0x26   :  { %v192_v45 = vmax.f32 %v190_v11, %v459_v9  ;;  %v195_v29 = vsel %vm158_vm1, %v189_v38, -inf  ;;  %v175_v30 = vrot.slane %v174_v32, 1  ;;  %v202_v53 = vsel %vm166_vm2, %v189_v38, -inf }
  0x27   :  { %v193_v24 = vmax.f32 %v191_v44, %v464_v12  ;;  %v196_v40 = vrot.slane %v195_v29, 4  ;;  %v155_v18 = vmax.f32 %v153_v25, %v154_v23  ;;  %v218_v19 = vmax.f32 %v404_v51, %v426_v59 }
  0x28   :  { %v219_v31 = vmax.f32 %v423_v58, %v441_v1  ;;  %v222_v52 = vmax.f32 %v467_v13, %v475_v17  ;;  %v183_v3 = vrot.slane %v182_v26, 1  ;;  %v223_v36 = vmax.f32 %v472_v16, %v480_v20 }
  0x29   :  { %v194_v9 = vmax.f32 %v192_v45, %v193_v24  ;;  %v197_v35 = vmax.f32 %v195_v29, %v196_v40  ;;  %v220_v12 = vmax.f32 %v218_v19, %v455_v7  ;;  %v250_v39 = vsel %vm249_vm5, %v111_v22, %v120_v14 }
  0x2a   :  { %v224_v34 = vmax.f32 %v222_v52, %v483_v21  ;;  %vm253_vm7 = vcmask 1042432   ;;  %v252_v1 = vsel %vm251_vm6, %v250_v39, %v127_v15  ;;  %v176_v42 = vmax.f32 %v174_v32, %v175_v30 }
  0x2b   :  { %v198_v51 = vrot.slane %v197_v35, 2  ;;  %v203_v59 = vsel %vm168_vm3, %v194_v9, -inf  ;;  %v211_v58 = vsel %vm177_vm4, %v194_v9, -inf  ;;  %v221_v37 = vmax.f32 %v220_v12, %v219_v31 }
  0x2c   :  { %v204_v13 = vmax.f32 %v202_v53, %v203_v59  ;;  %v212_v17 = vrot.slane %v211_v58, 4  ;;  %v225_v41 = vmax.f32 %v224_v34, %v223_v36  ;;  %v254_v7 = vsel %vm253_vm7, %v252_v1, %v148_v27 }
  0x2d   :  { %v199_v16 = vmax.f32 %v197_v35, %v198_v51  ;;  %vm255_vm8 = vcmask 1043456   ;;  %v226_v43 = vsel %vm158_vm1, %v221_v37, -inf  ;;  %v233_v46 = vsel %vm166_vm2, %v221_v37, -inf }
  0x2e   :  { %v205_v20 = vrot.slane %v204_v13, 4  ;;  %v213_v21 = vmax.f32 %v211_v58, %v212_v17  ;;  %v227_v47 = vrot.slane %v226_v43, 4  ;;  %v234_v48 = vsel %vm168_vm3, %v225_v41, -inf }
  0x2f   :  { %v242_v49 = vsel %vm177_vm4, %v225_v41, -inf  ;;  %vm257_vm9 = vcmask 1044480   ;;  %v235_v55 = vmax.f32 %v233_v46, %v234_v48  ;;  %v200_v57 = vrot.slane %v199_v16, 1 }
  0x30   :  { %v206_v50 = vmax.f32 %v204_v13, %v205_v20  ;;  %v214_v54 = vrot.slane %v213_v21, 2  ;;  %v243_v56 = vrot.slane %v242_v49, 4  ;;  %v228_v60 = vmax.f32 %v226_v43, %v227_v47 }
  0x31   :  { %v256_v61 = vsel %vm255_vm8, %v254_v7, %v155_v18  ;;  %vm259_vm10 = vcmask 1045504   ;;  %v236_v0 = vrot.slane %v235_v55, 4  ;;  %v184_v4 = vmax.f32 %v182_v26, %v183_v3 }
  0x32   :  { %v207_v62 = vrot.slane %v206_v50, 2  ;;  %v215_v63 = vmax.f32 %v213_v21, %v214_v54  ;;  %v244_v2 = vmax.f32 %v242_v49, %v243_v56  ;;  %v229_v5 = vrot.slane %v228_v60, 2 }
  0x33   :  { %v258_v6 = vsel %vm257_vm9, %v256_v61, %v165_v28  ;;  %vm261_vm11 = vcmask 1046528   ;;  %v237_v25 = vmax.f32 %v235_v55, %v236_v0  ;;  %v201_v15 = vmax.f32 %v199_v16, %v200_v57 }
  0x34   :  { %v208_v8 = vmax.f32 %v206_v50, %v207_v62  ;;  %v216_v10 = vrot.slane %v215_v63, 1  ;;  %v245_v33 = vrot.slane %v244_v2, 2  ;;  %v230_v11 = vmax.f32 %v228_v60, %v229_v5 }
  0x35   :  { %v260_v14 = vsel %vm259_vm10, %v258_v6, %v176_v42  ;;  %v238_v38 = vrot.slane %v237_v25, 2  ;;  %vm269_vm12 = vcmask 62464  }
  0x36   :  { %v209_v32 = vrot.slane %v208_v8, 1  ;;  %v246_v22 = vmax.f32 %v244_v2, %v245_v33  ;;  %v217_v23 = vmax.f32 %v215_v63, %v216_v10  ;;  %v231_v44 = vrot.slane %v230_v11, 1 }
  0x37   :  { %v262_v27 = vsel %vm261_vm11, %v260_v14, %v184_v4  ;;  %v239_v29 = vmax.f32 %v237_v25, %v238_v38 }
  0x38   :  { %v210_v45 = vmax.f32 %v208_v8, %v209_v32  ;;  %v247_v26 = vrot.slane %v246_v22, 1  ;;  %268 = vst.msk [vmem:[%s569_s1] sm:$0xff] %vm40_vm0, %v262_v27  ;;  %v232_v28 = vmax.f32 %v230_v11, %v231_v44 }
  0x39   :  { %v240_v30 = vrot.slane %v239_v29, 1 }
  0x3a   :  { %v263_v24 = vsel %vm249_vm5, %v201_v15, %v210_v45  ;;  %v248_v40 = vmax.f32 %v246_v22, %v247_v26 }
  0x3b   :  { %v264_v53 = vsel %vm251_vm6, %v263_v24, %v217_v23  ;;  %v241_v18 = vmax.f32 %v239_v29, %v240_v30 }
  0x3c   :  { %v265_v19 = vsel %vm253_vm7, %v264_v53, %v232_v28 }
  0x3d   :  { %v266_v31 = vsel %vm255_vm8, %v265_v19, %v241_v18 }
  0x3e   :  { %v267_v52 = vsel %vm257_vm9, %v266_v31, %v248_v40 }
  0x3f   :  { %270 = vst.msk [vmem:[%s569_s1 + $0x8] sm:$0x3f] %vm269_vm12, %v267_v52 }

</bundles_post_ra>
